<compile_context>
chip_gen: v6e
topology: v6e:2x2x1
jax: 0.10.0
libtpu: 0.0.40
codegen_flags: <defaults>
</compile_context>

<pallas_src>
import functools

import jax
import jax.numpy as jnp
from jax.experimental import pallas as pl
from jax.experimental.pallas import tpu as pltpu


def _round_up(x, m):
    return ((x + m - 1) // m) * m


def _dist_embed_kernel(dist_ref, emb_low_ref, m_ref, out_ref, *,
                       min_d, max_d, inv_denom, use_mxu):
    # dist_ref:    (T, fold)          distances (folded rows x fold lanes)
    # emb_low_ref: (1, fold*D)        emb_low tiled across the fold segments
    # m_ref:       (fold, fold*D)     block-diagonal selector carrying diff
    # out_ref:     (T, fold*D)
    d = jnp.clip(dist_ref[...], 0.0, max_d)        # same clip as the module
    t = (d - min_d) * inv_denom                    # (T, fold) lerp weight in f32
    if use_mxu:
        # Expand t across each distance's D-lane segment on the MXU (idle unit).
        # One nonzero term per output column -> HIGHEST precision is f32-exact.
        expanded = jnp.dot(t, m_ref[...],
                           preferred_element_type=jnp.float32,
                           precision=jax.lax.Precision.HIGHEST)
    else:
        # fold == 1 fallback: plain lane-broadcast multiply.
        expanded = t * m_ref[...]                  # (T,1) * (1,D)
    out_ref[...] = (emb_low_ref[...] + expanded).astype(out_ref.dtype)


def distance_embedding_stan(dist, emb_min, emb_max, emb_max_traj, *,
                            min_d, max_d_ch2tj, max_d_tj2tj, dist_type,
                            tile_rows=2048, lane_target=512,
                            out_dtype=jnp.float32, return_padded=False):
    """Pallas equivalent of DistanceEmbedding_STAN.forward.

    dist: (N,) float array.
    emb_min / emb_max / emb_max_traj: (1, D) embedding weights.
    tile_rows: grid tile size in *folded* rows (each folded row packs
               F = lane_target // D distances into the lane dimension).
    Returns (N, D) in `out_dtype` (or the padded (N_pad, D) result plus N when
    return_padded=True, so downstream code can avoid the slice re-copy).
    """
    # dist_type dispatch is static (a Python string), same as in the module.
    if dist_type == 'ch2tj':
        emb_low, emb_high = emb_min, emb_max
        max_d = max_d_ch2tj
    else:
        emb_low, emb_high = emb_min, emb_max_traj
        max_d = max_d_tj2tj

    min_d = float(min_d)
    max_d = float(max_d)
    assert max_d != min_d, "max_d == min_d would divide by zero (as in the module)"
    inv_denom = 1.0 / (max_d - min_d)

    n = dist.shape[0]
    d_dim = emb_low.shape[-1]

    # Fold F distances into the lane dimension (lane-dense output stores).
    if d_dim <= lane_target and lane_target % d_dim == 0:
        fold = lane_target // d_dim
    elif d_dim <= 128 and 128 % d_dim == 0:
        fold = 128 // d_dim
    else:
        fold = 1  # lane_w = D (< or not a divisor of 128): masked stores, perf only
    lane_w = fold * d_dim

    n_fold = pl.cdiv(n, fold)
    # Tile size in folded rows: multiple of 8 sublanes, no bigger than needed.
    t_fold = min(int(tile_rows), _round_up(n_fold, 8))
    t_fold = max(8, (t_fold // 8) * 8)
    n_steps = pl.cdiv(n_fold, t_fold)
    # Keep >= 2 grid steps when there is enough work so the "parallel" axis can
    # shard across both TensorCores on v7x.
    if n_steps < 2 and n_fold >= 16:
        t_fold = max(8, _round_up(pl.cdiv(n_fold, 2), 8))
        n_steps = pl.cdiv(n_fold, t_fold)
    n_fold_pad = n_steps * t_fold
    grid = (n_steps,)

    # Pad N up to a tile multiple (pad rows sliced off after the call if needed).
    pad = n_fold_pad * fold - n
    dist_p = dist.astype(jnp.float32)
    if pad:
        dist_p = jnp.pad(dist_p, (0, pad))
    dist2d = dist_p.reshape(n_fold_pad, fold)

    # Constants built once in the wrapper: emb_low tiled across fold segments,
    # and the block-diagonal selector M[f, f*D:(f+1)*D] = emb_high - emb_low.
    emb_low_f = emb_low.astype(jnp.float32).reshape(1, d_dim)
    diff_f = (emb_high.astype(jnp.float32).reshape(1, d_dim) - emb_low_f).reshape(d_dim)
    emb_low_row = jnp.tile(emb_low_f, (1, fold))                          # (1, lane_w)
    eye = jnp.eye(fold, dtype=jnp.float32)
    m_sel = (eye[:, :, None] * diff_f[None, None, :]).reshape(fold, lane_w)

    kernel = functools.partial(
        _dist_embed_kernel,
        min_d=min_d, max_d=max_d, inv_denom=inv_denom, use_mxu=(fold > 1))

    # VMEM pipeline footprint estimate (double-buffered) -> explicit limit so
    # large tiles also compile on v5e's smaller scoped-VMEM default.
    pad_fold_lane = _round_up(fold, 128)          # narrow dist block pads to 128 lanes
    pad_fold_sub = _round_up(fold, 8)
    vmem_est = (2 * t_fold * pad_fold_lane * 4    # dist blocks
                + 2 * t_fold * lane_w * 4         # output blocks
                + 2 * 8 * lane_w * 4              # emb_low row
                + 2 * pad_fold_sub * lane_w * 4)  # selector M
    vmem_limit = int(min(max(vmem_est * 5 // 4, 16 << 20), 56 << 20))

    out = pl.pallas_call(
        kernel,
        out_shape=jax.ShapeDtypeStruct((n_fold_pad, lane_w), out_dtype),
        grid_spec=pl.GridSpec(
            grid=grid,
            in_specs=[
                pl.BlockSpec((t_fold, fold), lambda i: (i, 0)),
                pl.BlockSpec((1, lane_w), lambda i: (0, 0)),
                pl.BlockSpec((fold, lane_w), lambda i: (0, 0)),
            ],
            out_specs=pl.BlockSpec((t_fold, lane_w), lambda i: (i, 0)),
        ),
        compiler_params=pltpu.CompilerParams(
            dimension_semantics=("parallel",),
            vmem_limit_bytes=vmem_limit),
    )(dist2d, emb_low_row, m_sel)

    # Unfold lanes back to rows: contiguous reshape (free layout plumbing).
    out = out.reshape(n_fold_pad * fold, d_dim)
    if return_padded:
        return out, n
    if pad:
        out = out[:n]        # only re-copy the output when padding was added
    return out


def _reference(dist, emb_low, emb_high, min_d, max_d):
    d = jnp.clip(dist, 0.0, max_d)
    vsl = (d - min_d)[:, None]
    vsu = (max_d - d)[:, None]
    return (emb_low * vsu + emb_high * vsl) / (max_d - min_d)


if __name__ == "__main__":
    key = jax.random.PRNGKey(0)
    k_d, k_min, k_max, k_maxtj = jax.random.split(key, 4)

    # Module config (spatial_slots = (min_d, max_d_ch2tj, max_d_tj2tj))
    embedding_dim = 32
    min_d, max_d_ch2tj, max_d_tj2tj = 0.0, 10.0, 20.0

    # Deterministic "parameters" (nn.Embedding(1, dist_dim) weights)
    embed_min = jax.random.normal(k_min, (1, embedding_dim), dtype=jnp.float32)
    embed_max = jax.random.normal(k_max, (1, embedding_dim), dtype=jnp.float32)
    embed_max_traj = jax.random.normal(k_maxtj, (1, embedding_dim), dtype=jnp.float32)

    ok = True
    # Ragged sizes (exercise padding) and a larger one (exercises multi-step grid).
    for n in (37, 300):
        dist = jax.random.uniform(k_d, (n,), dtype=jnp.float32,
                                  minval=-5.0, maxval=30.0)  # includes out-of-range
        for dist_type in ("ch2tj", "tj2tj"):
            for tile_rows in (2048, 8):  # default tile and a short-tile multi-step grid
                out = distance_embedding_stan(
                    dist, embed_min, embed_max, embed_max_traj,
                    min_d=min_d, max_d_ch2tj=max_d_ch2tj, max_d_tj2tj=max_d_tj2tj,
                    dist_type=dist_type, tile_rows=tile_rows)
                out = jax.block_until_ready(out)

                if dist_type == "ch2tj":
                    ref = _reference(dist, embed_min, embed_max, min_d, max_d_ch2tj)
                else:
                    ref = _reference(dist, embed_min, embed_max_traj, min_d, max_d_tj2tj)

                if out.shape != ref.shape or not jnp.allclose(out, ref,
                                                              atol=1e-5, rtol=1e-5):
                    ok = False

    if ok:
        print("KERNEL_OK")
</pallas_src>

<mosaic_0001>
module attributes {stable_mosaic.version = 11 : i64} {
  func.func @_dist_embed_kernel(%arg0: i32, %arg1: memref<8x16xf32, #tpu.memory_space<vmem>>, %arg2: memref<1x512xf32, #tpu.memory_space<vmem>>, %arg3: memref<16x512xf32, #tpu.memory_space<vmem>>, %arg4: memref<8x512xf32, #tpu.memory_space<vmem>>) attributes {dimension_semantics = [#tpu.dimension_semantics<parallel>], iteration_bounds = array<i64: 1>, scalar_prefetch = 0 : i64, scratch_operands = 0 : i64, tpu.core_type = #tpu.core_type<tc>, window_params = [{transform_indices = @transform_0, window_bounds = array<i64: 8, 16>}, {pipeline_mode = #tpu.pipeline_mode<synchronous>, transform_indices = @transform_1, window_bounds = array<i64: 1, 512>}, {pipeline_mode = #tpu.pipeline_mode<synchronous>, transform_indices = @transform_2, window_bounds = array<i64: 16, 512>}, {transform_indices = @transform_3, window_bounds = array<i64: 8, 512>}]} {
    %c0 = arith.constant 0 : index
    %c0_0 = arith.constant 0 : index
    %0 = vector.load %arg1[%c0, %c0_0] : memref<8x16xf32, #tpu.memory_space<vmem>>, vector<8x16xf32>
    %cst = arith.constant 0.000000e+00 : f32
    %cst_1 = arith.constant 1.000000e+01 : f32
    %1 = vector.broadcast %cst : f32 to vector<8x16xf32>
    %2 = arith.maximumf %1, %0 : vector<8x16xf32>
    %3 = vector.broadcast %cst_1 : f32 to vector<8x16xf32>
    %4 = arith.minimumf %3, %2 : vector<8x16xf32>
    %cst_2 = arith.constant 0.000000e+00 : f32
    %5 = vector.broadcast %cst_2 : f32 to vector<8x16xf32>
    %6 = arith.subf %4, %5 : vector<8x16xf32>
    %cst_3 = arith.constant 1.000000e-01 : f32
    %7 = vector.broadcast %cst_3 : f32 to vector<8x16xf32>
    %8 = arith.mulf %6, %7 : vector<8x16xf32>
    %c0_4 = arith.constant 0 : index
    %c0_5 = arith.constant 0 : index
    %9 = vector.load %arg3[%c0_4, %c0_5] : memref<16x512xf32, #tpu.memory_space<vmem>>, vector<16x512xf32>
    %cst_6 = arith.constant dense<0.000000e+00> : vector<8x512xf32>
    %10 = tpu.matmul %8, %9, %cst_6 {dimension_numbers = #tpu.dot_dimension_numbers<[1], [0], [0], [1], [0, 0, 1, 1], [], []>, precision = #tpu.contract_precision<fp32>} : vector<8x16xf32>, vector<16x512xf32>, vector<8x512xf32> -> vector<8x512xf32>
    %c0_7 = arith.constant 0 : index
    %c0_8 = arith.constant 0 : index
    %11 = vector.load %arg2[%c0_7, %c0_8] : memref<1x512xf32, #tpu.memory_space<vmem>>, vector<1x512xf32>
    %12 = vector.broadcast %11 : vector<1x512xf32> to vector<8x512xf32>
    %13 = arith.addf %12, %10 : vector<8x512xf32>
    %c0_9 = arith.constant 0 : index
    %c0_10 = arith.constant 0 : index
    %14 = vector.load %arg4[%c0_9, %c0_10] : memref<8x512xf32, #tpu.memory_space<vmem>>, vector<8x512xf32>
    tpu.vector_store %arg4[%c0_9, %c0_10], %13 {strides = array<i32>} : memref<8x512xf32, #tpu.memory_space<vmem>>, vector<8x512xf32>,
    return
  }
  func.func @transform_0(%arg0: i32) -> (i32, i32) {
    %c0_i32 = arith.constant 0 : i32
    %c0_i32_0 = arith.constant 0 : i32
    return %arg0, %c0_i32 : i32, i32
  }
  func.func @transform_1(%arg0: i32) -> (i32, i32) {
    %c0_i32 = arith.constant 0 : i32
    %c0_i32_0 = arith.constant 0 : i32
    %c0_i32_1 = arith.constant 0 : i32
    return %c0_i32, %c0_i32_0 : i32, i32
  }
  func.func @transform_2(%arg0: i32) -> (i32, i32) {
    %c0_i32 = arith.constant 0 : i32
    %c0_i32_0 = arith.constant 0 : i32
    %c0_i32_1 = arith.constant 0 : i32
    return %c0_i32, %c0_i32_0 : i32, i32
  }
  func.func @transform_3(%arg0: i32) -> (i32, i32) {
    %c0_i32 = arith.constant 0 : i32
    %c0_i32_0 = arith.constant 0 : i32
    return %arg0, %c0_i32 : i32, i32
  }
}

</mosaic_0001>

<bundles_post_ra>
// kernel: tpu_custom_call.1
= control target key start
LH: loop header
LB: loop body
LE: loop exit
PB: predicated region body
PF: predicated region fallthrough
CT: control target
= control target key end

     0   :  { %8 = vsyncpa [#allocation3], 0  ;;  %s1348_s0 = inlined_call_operand.hbm [shape: f32[8,16], index: 0, kind: input, shape index: {}]   ;;  %s1349_s1 = inlined_call_operand.hbm [shape: f32[1,512], index: 1, kind: input, shape index: {}]   ;;  %s1350_s2 = inlined_call_operand.hbm [shape: f32[16,512], index: 2, kind: input, shape index: {}]   ;;  %s1351_s3 = inlined_call_operand.hbm [shape: f32[8,512], index: 3, kind: output, shape index: {}]  }
   0x1   :  { %9 = vsyncpa [#allocation6], 0 }
   0x2   :  { %10 = vsyncpa [#allocation4], 0  ;;  %s1189_s12 = smov [#allocation5]   ;;  %s1190_s14 = smov [#allocation2]  }
   0x3   :  { %s27_s13 = sshll.u32 %s1189_s12, 4  ;;  %s17_s15 = sshll.u32 %s1190_s14, 4  ;;  %s28_s13 = int_to_ptr.vmem [resolvable:$true] %s27_s13  ;;  %s18_s15 = int_to_ptr.vmem [resolvable:$true] %s17_s15 }
   0x4   :  { %s1111_s16 = scalar_lea.vmem %s28_s13, 64  ;;  %p1116_p1 = scmp.lt.s32.totalorder %s28_s13, %s28_s13 }
   0x5   :  { %p1112_p0 = scmp.ne.s32.totalorder %s28_s13, %s1111_s16  ;;  %p1117_p2 = scmp.lt.s32.totalorder %s1111_s16, %s1111_s16 }
   0x7   :  { %p1118_p3 = por %p1117_p2, %p1116_p1 }
   0x9   :  { %p1119_p4 = pnand %p1118_p3, %p1112_p0 }
   0xb   :  { %1122 = shalt.err (!%p1119_p4)
}
   0xc   :  { %30 = dma.hbm_to_vmem [thread:$0]  %s1349_s1, 64, %s28_s13, [#allocation6]  }
   0xd   :  { %s1131_s19 = scalar_lea.vmem %s18_s15, 128  ;;  %p1136_p6 = scmp.lt.s32.totalorder %s18_s15, %s18_s15 }
   0xe   :  { %p1132_p5 = scmp.ne.s32.totalorder %s18_s15, %s1131_s19  ;;  %p1137_p7 = scmp.lt.s32.totalorder %s1131_s19, %s1131_s19 }
  0x10   :  { %p1138_p8 = por %p1137_p7, %p1136_p6 }
  0x12   :  { %p1139_p9 = pnand %p1138_p8, %p1132_p5 }
  0x14   :  { %1142 = shalt.err (!%p1139_p9)
}
  0x15   :  { %20 = dma.hbm_to_vmem [thread:$0]  %s1348_s0, 128, %s18_s15, [#allocation3]  }
  0x16   :  { %s1191_s22 = smov [#allocation7]  }
  0x17   :  { %s36_s23 = sshll.u32 %s1191_s22, 4  ;;  %s37_s23 = int_to_ptr.vmem [resolvable:$true] %s36_s23 }
  0x18   :  { %s1151_s24 = scalar_lea.vmem %s37_s23, 1024  ;;  %p1156_p11 = scmp.lt.s32.totalorder %s37_s23, %s37_s23 }
  0x19   :  { %p1152_p10 = scmp.ne.s32.totalorder %s37_s23, %s1151_s24  ;;  %p1157_p12 = scmp.lt.s32.totalorder %s1151_s24, %s1151_s24 }
  0x1b   :  { %p1158_p13 = por %p1157_p12, %p1156_p11 }
  0x1d   :  { %p1159_p0 = pnand %p1158_p13, %p1152_p10 }
  0x1f   :  { %1162 = shalt.err (!%p1159_p0)
}
  0x20   :  { %s1192_s1 = smov 512   ;;  %s1193_s25 = smov 32  }
  0x21   :  { %42 = dma.hbm_to_vmem [thread:$0]  %s1350_s2, 1024, %s37_s23, [#allocation6], %s1192_s1, %s1192_s1, %s1193_s25  }
  0x22   :  { %1183 = dma.done.wait [#allocation3], 128  }
  0x23   :  { %1184 = vsyncadd [#allocation3], 4294967168 }
  0x24   :  { %1185 = dma.done.wait [#allocation6], 1088  }
  0x25   :  { %1186 = vsyncadd [#allocation6], 4294966208  ;;  %v1194_v0 = vmov 0.0   ;;  %v61_v1 = vld [vmem:[#allocation7 + $0x28] sm:$0xff]  ;;  %v60_v2 = vld [vmem:[#allocation7 + $0x20] sm:$0xff]  ;;  %vm64_vm0 = vcmask 130048   ;;  %v1052_v61 = vlaneseq }
  0x26   :  { %136 = vmatprep.mubr.f32.mxu0 %v1194_v0  ;;  %232 = vmatprep.mubr.f32.mxu1 %v1194_v0  ;;  %v57_v3 = vld [vmem:[#allocation7 + $0x8] sm:$0xff]  ;;  %v1227_v4 = vand.u32 4294901760, %v61_v1  ;;  %v1229_v5 = vand.u32 4294901760, %v60_v2  ;;  %v56_v7 = vld [vmem:[#allocation7] sm:$0xff]  ;;  %v52_v8 = vld [vmem:[#allocation2] sm:$0xff]  ;;  %s1195_s0 = smov [#allocation8]  }
  0x27   :  { %v1231_v6 = vand.u32 4294901760, %v57_v3  ;;  %v1233_v9 = vand.u32 4294901760, %v56_v7  ;;  %v53_v10 = vmax.f32 %v52_v8, 0.0  ;;  %v63_v19 = vld [vmem:[#allocation7 + $0x38] sm:$0xff]  ;;  %v62_v25 = vld [vmem:[#allocation7 + $0x30] sm:$0xff]  ;;  %s1086_s2 = sshll.u32 %s1195_s0, 4  ;;  %s1087_s2 = int_to_ptr.vmem [resolvable:$true] %s1086_s2 }
  0x28   :  { %97 = vmatprep.subr.mxu0 %v1227_v4  ;;  %v1237_v11 = vsub.f32 %v61_v1, %v1227_v4  ;;  %v1240_v12 = vsub.f32 %v60_v2, %v1229_v5  ;;  %v1260_v28 = vand.u32 4294901760, %v63_v19  ;;  %v59_v29 = vld [vmem:[#allocation7 + $0x18] sm:$0xff]  ;;  %v58_v34 = vld [vmem:[#allocation7 + $0x10] sm:$0xff]  ;;  %v1264_v36 = vand.u32 4294901760, %v62_v25  ;;  %s1163_s28 = scalar_lea.vmem %s1087_s2, 512  ;;  %p1168_p2 = scmp.lt.s32.totalorder %s1087_s2, %s1087_s2 }
  0x29   :  { %v1243_v13 = vsub.f32 %v57_v3, %v1231_v6  ;;  %99 = vmatpush1.msra.mxu0 %v1229_v5  ;;  %v1247_v14 = vsub.f32 %v56_v7, %v1233_v9  ;;  %v54_v15 = vmin.f32 %v53_v10, 10.0  ;;  %v1269_v38 = vand.u32 4294901760, %v59_v29  ;;  %p1164_p1 = scmp.ne.s32.totalorder %s1087_s2, %s1163_s28  ;;  %p1169_p3 = scmp.lt.s32.totalorder %s1163_s28, %s1163_s28 }
  0x2a   :  { %v178_v16 = vand.u32 4294901760, %v1237_v11  ;;  %101 = vmatprep.subr.mxu0 %v1231_v6  ;;  %v184_v17 = vand.u32 4294901760, %v1240_v12  ;;  %v1271_v39 = vand.u32 4294901760, %v58_v34  ;;  %v1277_v41 = vsub.f32 %v63_v19, %v1260_v28 }
  0x2b   :  { %v190_v18 = vand.u32 4294901760, %v1243_v13  ;;  %103 = vmatpush1.msra.mxu0 %v1233_v9  ;;  %v196_v20 = vand.u32 4294901760, %v1247_v14  ;;  %v55_v21 = vmul.f32 0.1, %v54_v15  ;;  %v1280_v42 = vsub.f32 %v62_v25, %v1264_v36  ;;  %p1170_p4 = por %p1169_p3, %p1168_p2 }
  0x2c   :  { %v179_v22 = vsub.f32 %v1237_v11, %v178_v16  ;;  %v185_v23 = vsub.f32 %v1240_v12, %v184_v17  ;;  %270 = vmatprep.subr.mxu0 %v1237_v11  ;;  %v1287_v44 = vsub.f32 %v59_v29, %v1269_v38  ;;  %v1292_v45 = vsub.f32 %v58_v34, %v1271_v39  ;;  %v1050_v11 = vld [vmem:[#allocation5] sm:$0xf] }
  0x2d   :  { %v191_v24 = vsub.f32 %v1243_v13, %v190_v18  ;;  %v197_v26 = vsub.f32 %v1247_v14, %v196_v20  ;;  %v66_v27 = vsel %vm64_vm0, %v55_v21, 0  ;;  %v669_v47 = vand.u32 4294901760, %v1277_v41  ;;  %p1171_p5 = pnand %p1170_p4, %p1164_p1 }
  0x2e   :  { %v180_v30 = vand.u32 4294901760, %v179_v22  ;;  %v186_v31 = vand.u32 4294901760, %v185_v23  ;;  %v1262_v33 = vand.u32 4294901760, %v66_v27  ;;  %v675_v48 = vand.u32 4294901760, %v1280_v42 }
  0x2f   :  { %v192_v32 = vand.u32 4294901760, %v191_v24  ;;  %v198_v35 = vand.u32 4294901760, %v197_v26  ;;  %v681_v49 = vand.u32 4294901760, %v1287_v44  ;;  %v687_v50 = vand.u32 4294901760, %v1292_v45 }
  0x30   :  { %181 = vmatprep.subr.mxu1 %v180_v30  ;;  %v1267_v37 = vsub.f32 %v66_v27, %v1262_v33  ;;  %v670_v51 = vsub.f32 %v1277_v41, %v669_v47  ;;  %v676_v52 = vsub.f32 %v1280_v42, %v675_v48  ;;  %v1053_v2 = vshrl.u32 %v1052_v61, 7 }
  0x31   :  { %187 = vmatpush1.msra.mxu1 %v186_v31  ;;  %v682_v53 = vsub.f32 %v1287_v44, %v681_v49  ;;  %v688_v54 = vsub.f32 %v1292_v45, %v687_v50 }
  0x32   :  { %193 = vmatprep.subr.mxu1 %v192_v32  ;;  %v1274_v40 = vand.u32 4294901760, %v1267_v37  ;;  %v671_v55 = vand.u32 4294901760, %v670_v51  ;;  %v677_v56 = vand.u32 4294901760, %v676_v52 }
  0x33   :  { %199 = vmatpush1.msra.mxu1 %v198_v35  ;;  %v683_v57 = vand.u32 4294901760, %v682_v53  ;;  %v689_v58 = vand.u32 4294901760, %v688_v54 }
  0x34   :  { %v140_v43 = vsub.f32 %v1267_v37, %v1274_v40  ;;  %234 = vmatmul.mubr.f32.vlgmr.msra.gmra.mxu1 %v1262_v33  ;;  %350 = vmatprep.subr.mxu1 %v1227_v4 }
  0x35   :  { %352 = vmatpush1.msra.mxu1 %v1229_v5  ;;  %389 = vmatprep.mubr.f32.mxu1 %v1194_v0 }
  0x36   :  { %v141_v46 = vand.u32 4294901760, %v140_v43  ;;  %354 = vmatprep.subr.mxu1 %v1231_v6 }
  0x37   :  { %356 = vmatpush1.msra.mxu1 %v1233_v9 }
  0x38   :  { %142 = vmatmul.mubr.f32.vlgmr.msra.gmra.mxu0 %v141_v46  ;;  %393 = vmatmul.mubr.f32.vlgmr.msra.gmra.mxu1 %v1274_v40 }
  0x39   :  { %273 = vmatpush1.msra.mxu0 %v1240_v12  ;;  %312 = vmatprep.mubr.f32.mxu0 %v1194_v0  ;;  %v1058_v12 = vsub.s32 1, %v1053_v2 }
  0x3a   :  { %276 = vmatprep.subr.mxu0 %v1243_v13  ;;  %512 = vmatprep.subr.mxu1 %v1227_v4 }
  0x3b   :  { %279 = vmatpush1.msra.mxu0 %v1247_v14  ;;  %514 = vmatpush1.msra.mxu1 %v1229_v5  ;;  %v1059_v22 = vrot.slane %v1050_v11, %v1058_v12 }
  0x3c   :  { %430 = vmatprep.subr.mxu0 %v178_v16  ;;  %315 = vmatmul.mubr.f32.vlgmr.msra.gmra.mxu0 %v1267_v37 }
  0x3d   :  { %434 = vmatpush1.msra.mxu0 %v184_v17  ;;  %516 = vmatprep.subr.mxu1 %v1231_v6 }
  0x3e   :  { %438 = vmatprep.subr.mxu0 %v190_v18  ;;  %475 = vmatprep.mubr.f32.mxu0 %v1194_v0 }
  0x3f   :  { %442 = vmatpush1.msra.mxu0 %v196_v20  ;;  %518 = vmatpush1.msra.mxu1 %v1233_v9  ;;  %v1054_v9 = vsub.s32 0, %v1053_v2 }
  0x40   :  { %551 = vmatprep.mubr.f32.mxu1 %v1194_v0  ;;  %588 = vmatprep.subr.mxu0 %v1260_v28 }
  0x41   :  { %477 = vmatmul.mubr.f32.vlgmr.msra.gmra.mxu0 %v1262_v33  ;;  %553 = vmatmul.mubr.f32.vlgmr.msra.gmra.mxu1 %v1262_v33  ;;  %v1055_v17 = vrot.slane %v1050_v11, %v1054_v9 }
  0x42   :  { %590 = vmatpush1.msra.mxu0 %v1264_v36  ;;  %672 = vmatprep.subr.mxu1 %v671_v55 }
  0x43   :  { %592 = vmatprep.subr.mxu0 %v1269_v38  ;;  %678 = vmatpush1.msra.mxu1 %v677_v56 }
  0x44   :  { %594 = vmatpush1.msra.mxu0 %v1271_v39  ;;  %684 = vmatprep.subr.mxu1 %v683_v57 }
  0x45   :  { %627 = vmatprep.mubr.f32.mxu0 %v1194_v0  ;;  %690 = vmatpush1.msra.mxu1 %v689_v58 }
  0x46   :  { %723 = vmatprep.mubr.f32.mxu1 %v1194_v0  ;;  %761 = vmatprep.subr.mxu0 %v1277_v41 }
  0x47   :  { %633 = vmatmul.mubr.f32.vlgmr.msra.gmra.mxu0 %v141_v46  ;;  %725 = vmatmul.mubr.f32.vlgmr.msra.gmra.mxu1 %v1262_v33 }
  0x48   :  { %764 = vmatpush1.msra.mxu0 %v1280_v42  ;;  %841 = vmatprep.subr.mxu1 %v1260_v28 }
  0x49   :  { %767 = vmatprep.subr.mxu0 %v1287_v44  ;;  %843 = vmatpush1.msra.mxu1 %v1264_v36 }
  0x4a   :  { %770 = vmatpush1.msra.mxu0 %v1292_v45  ;;  %845 = vmatprep.subr.mxu1 %v1269_v38 }
  0x4b   :  { %803 = vmatprep.mubr.f32.mxu0 %v1194_v0  ;;  %847 = vmatpush1.msra.mxu1 %v1271_v39 }
  0x4c   :  { %880 = vmatprep.mubr.f32.mxu1 %v1194_v0  ;;  %921 = vmatprep.subr.mxu0 %v669_v47 }
  0x4d   :  { %806 = vmatmul.mubr.f32.vlgmr.msra.gmra.mxu0 %v1267_v37  ;;  %884 = vmatmul.mubr.f32.vlgmr.msra.gmra.mxu1 %v1274_v40  ;;  %v1062_v37 = vsub.s32 2, %v1053_v2  ;;  %v1066_v40 = vsub.s32 3, %v1053_v2 }
  0x4e   :  { %925 = vmatpush1.msra.mxu0 %v675_v48  ;;  %1003 = vmatprep.subr.mxu1 %v1260_v28 }
  0x4f   :  { %929 = vmatprep.subr.mxu0 %v681_v49  ;;  %1005 = vmatpush1.msra.mxu1 %v1264_v36  ;;  %v1063_v45 = vrot.slane %v1050_v11, %v1062_v37  ;;  %v1067_v49 = vrot.slane %v1050_v11, %v1066_v40 }
  0x50   :  { %933 = vmatpush1.msra.mxu0 %v687_v50  ;;  %1007 = vmatprep.subr.mxu1 %v1269_v38 }
  0x51   :  { %966 = vmatprep.mubr.f32.mxu0 %v1194_v0  ;;  %1009 = vmatpush1.msra.mxu1 %v1271_v39 }
  0x52   :  { %1042 = vmatprep.mubr.f32.mxu1 %v1194_v0  ;;  %968 = vmatmul.mubr.f32.vlgmr.msra.gmra.mxu0 %v1262_v33 }
  0x53   :  { %1044 = vmatmul.mubr.f32.vlgmr.msra.gmra.mxu1 %v1262_v33 }
  0xf4   :  { %v235_v59 = vpop.f32.mrf.mxu1 }
  0xf6   :  { %v237_v60 = vpop.f32.mrf.mxu1 }
  0xf8   :  { %v143_v62 = vpop.f32.mrf.mxu0  ;;  %v394_v63 = vpop.f32.mrf.mxu1 }
  0xf9   :  { %v236_v3 = vadd.f32 %v235_v59, %v143_v62 }
  0xfa   :  { %v145_v1 = vpop.f32.mrf.mxu0  ;;  %v396_v7 = vpop.f32.mrf.mxu1 }
  0xfb   :  { %v238_v5 = vadd.f32 %v237_v60, %v145_v1 }
  0xfc   :  { %v316_v4 = vpop.f32.mrf.mxu0 }
  0xfd   :  { %v317_v6 = vadd.f32 %v316_v4, %v236_v3 }
  0xfe   :  { %v318_v8 = vpop.f32.mrf.mxu0 }
  0xff   :  { %v395_v10 = vadd.f32 %v394_v63, %v317_v6  ;;  %v319_v0 = vadd.f32 %v318_v8, %v238_v5 }
 0x101   :  { %v397_v13 = vadd.f32 %v396_v7, %v319_v0  ;;  %v478_v14 = vpop.f32.mrf.mxu0  ;;  %v554_v15 = vpop.f32.mrf.mxu1 }
 0x102   :  { %v479_v16 = vadd.f32 %v478_v14, %v395_v10 }
 0x103   :  { %v480_v18 = vpop.f32.mrf.mxu0  ;;  %v556_v19 = vpop.f32.mrf.mxu1 }
 0x104   :  { %v555_v20 = vadd.f32 %v554_v15, %v479_v16  ;;  %v481_v21 = vadd.f32 %v480_v18, %v397_v13 }
 0x106   :  { %v1072_v23 = vadd.f32 %v1055_v17, %v555_v20  ;;  %v557_v24 = vadd.f32 %v556_v19, %v481_v21 }
 0x107   :  { %v634_v25 = vpop.f32.mrf.mxu0  ;;  %v726_v26 = vpop.f32.mrf.mxu1 }
 0x108   :  { %1076 = vst [vmem:[#allocation8] sm:$0xff] %v1072_v23  ;;  %v1073_v27 = vadd.f32 %v1059_v22, %v557_v24  ;;  %v727_v30 = vadd.f32 %v726_v26, %v634_v25 }
 0x109   :  { %v636_v28 = vpop.f32.mrf.mxu0  ;;  %v728_v29 = vpop.f32.mrf.mxu1 }
 0x10a   :  { %1077 = vst [vmem:[#allocation8 + $0x8] sm:$0xff] %v1073_v27  ;;  %v729_v33 = vadd.f32 %v728_v29, %v636_v28 }
 0x10d   :  { %v807_v31 = vpop.f32.mrf.mxu0  ;;  %v885_v32 = vpop.f32.mrf.mxu1 }
 0x10e   :  { %v808_v34 = vadd.f32 %v807_v31, %v727_v30 }
 0x10f   :  { %v809_v35 = vpop.f32.mrf.mxu0  ;;  %v887_v36 = vpop.f32.mrf.mxu1 }
 0x110   :  { %v886_v38 = vadd.f32 %v885_v32, %v808_v34  ;;  %v810_v39 = vadd.f32 %v809_v35, %v729_v33 }
 0x112   :  { %v888_v41 = vadd.f32 %v887_v36, %v810_v39  ;;  %v969_v42 = vpop.f32.mrf.mxu0 }
 0x113   :  { %v970_v43 = vadd.f32 %v969_v42, %v886_v38  ;;  %v1045_v44 = vpop.f32.mrf.mxu1 }
 0x114   :  { %v971_v46 = vpop.f32.mrf.mxu0 }
 0x115   :  { %v1046_v47 = vadd.f32 %v1045_v44, %v970_v43  ;;  %v972_v48 = vadd.f32 %v971_v46, %v888_v41  ;;  %v1047_v50 = vpop.f32.mrf.mxu1 }
 0x117   :  { %v1074_v51 = vadd.f32 %v1063_v45, %v1046_v47  ;;  %v1048_v52 = vadd.f32 %v1047_v50, %v972_v48 }
 0x119   :  { %1078 = vst [vmem:[#allocation8 + $0x10] sm:$0xff] %v1074_v51  ;;  %v1075_v53 = vadd.f32 %v1067_v49, %v1048_v52 }
 0x11b   :  { %1079 = vst [vmem:[#allocation8 + $0x18] sm:$0xff] %v1075_v53 }
 0x11c   :  { %1174 = shalt.err (!%p1171_p5)
}
 0x11d   :  { %1089 = dma.vmem_to_hbm [thread:$0]  %s1087_s2, 512, %s1351_s3, [#allocation4]  }
 0x11e   :  { %1187 = dma.done.wait [#allocation4], 512  }
 0x11f   :  { %1188 = vsyncadd [#allocation4], 4294966784 }
 0x120   :  { %1093 = vsyncpa [#allocation3], 1 }
 0x121   :  { %1094 = vsyncpa [#allocation6], 1 }
 0x122   :  { %1095 = vsyncpa [#allocation4], 1 }

</bundles_post_ra>
